<compile_context>
chip_gen: v5e
topology: v5e:2x2
jax: 0.10.0
libtpu: 0.0.40
codegen_flags: <defaults>
</compile_context>

<pallas_src>
import functools

import jax
import jax.numpy as jnp
from jax.experimental import pallas as pl
from jax.experimental.pallas import tpu as pltpu


def _round_up(x, m):
    return (x + m - 1) // m * m


def mlp_kernel(x_ref, w0_ref, b0_ref, w1_ref, b1_ref, w2_ref, b2_ref, o_ref):
    # Per grid step:
    #   x:(TM,D0) bf16   w0:(D0,D1) bf16  b0:(1,D1) f32
    #   w1:(D1,D1) bf16  b1:(1,D1) f32
    #   w2:(1,D1) f32    b2:(1,1) f32     o:(TM,1) f32
    # Layer 0: MXU matmul (bf16 operands, f32 accumulate) + bias + tanh (EUP, f32).
    h = jnp.dot(x_ref[...], w0_ref[...], preferred_element_type=jnp.float32)
    h = jnp.tanh(h + b0_ref[...])

    # Layer 1: same structure; re-narrow the activations to bf16 only for the MXU.
    h = jnp.dot(h.astype(jnp.bfloat16), w1_ref[...],
                preferred_element_type=jnp.float32)
    h = jnp.tanh(h + b1_ref[...])

    # Final Linear(D1 -> 1): f32 VPU multiply + XLU lane reduction.
    # (An N=1 matmul would waste 127/128 MXU lanes; XLU/VPU slots are free here.)
    out = jnp.sum(h * w2_ref[...], axis=-1, keepdims=True) + b2_ref[...]
    o_ref[...] = out.astype(o_ref.dtype)


def prepare_params(params_list):
    """One-time layout/dtype preparation (hoisted out of the per-call path).

    PyTorch-style (out, in) weights -> (in, out) bf16 operands for the MXU;
    biases and the final 128->1 row stay f32.
    """
    (w0, b0), (w1, b1), (w2, b2) = params_list
    return (
        jnp.asarray(w0.T, jnp.bfloat16),                # (D0, D1)
        jnp.asarray(b0.reshape(1, -1), jnp.float32),    # (1, D1)
        jnp.asarray(w1.T, jnp.bfloat16),                # (D1, D1)
        jnp.asarray(b1.reshape(1, -1), jnp.float32),    # (1, D1)
        jnp.asarray(w2.reshape(1, -1), jnp.float32),    # (1, D1)
        jnp.asarray(b2.reshape(1, 1), jnp.float32),     # (1, 1)
    )


@functools.partial(jax.jit, static_argnames=("block_m",))
def mlp_forward(x, prepared, block_m=512):
    """x: (B, top_k, *spatial). Returns (B, top_k, 1), matching the PyTorch module."""
    w0t, b0r, w1t, b1r, w2r, b2r = prepared
    B, K = x.shape[0], x.shape[1]
    x2 = x.reshape(B * K, -1)                 # torch.flatten(input, start_dim=2)
    M, D0 = x2.shape
    D1 = w0t.shape[1]

    # Row tile: big enough to hit HBM roofline at scale, clamped + 8-aligned for
    # small M. Double-buffered bf16 x tile at TM=512 is 0.5 MiB -> fits every
    # generation's VMEM (incl. v7x's 64 MiB) with huge headroom.
    tm = min(block_m, _round_up(M, 8))
    m_pad = _round_up(M, tm)

    xm = x2.astype(jnp.bfloat16)              # halve HBM traffic for the big operand
    if m_pad != M:
        xm = jnp.pad(xm, ((0, m_pad - M), (0, 0)))

    grid = (m_pad // tm,)
    grid_spec = pltpu.PrefetchScalarGridSpec(
        num_scalar_prefetch=0,
        grid=grid,
        in_specs=[
            pl.BlockSpec((tm, D0), lambda i: (i, 0)),   # x: streamed per row-tile
            pl.BlockSpec((D0, D1), lambda i: (0, 0)),   # w0: VMEM-resident
            pl.BlockSpec((1, D1), lambda i: (0, 0)),    # b0
            pl.BlockSpec((D1, D1), lambda i: (0, 0)),   # w1
            pl.BlockSpec((1, D1), lambda i: (0, 0)),    # b1
            pl.BlockSpec((1, D1), lambda i: (0, 0)),    # w2 (final row)
            pl.BlockSpec((1, 1), lambda i: (0, 0)),     # b2
        ],
        out_specs=pl.BlockSpec((tm, 1), lambda i: (i, 0)),
    )

    out = pl.pallas_call(
        mlp_kernel,
        out_shape=jax.ShapeDtypeStruct((m_pad, 1), jnp.float32),
        grid_spec=grid_spec,
        compiler_params=pltpu.CompilerParams(
            dimension_semantics=("parallel",),   # megacore sharding on v7x; no-op on v5e/v6e
        ),
    )(xm, w0t, b0r, w1t, b1r, w2r, b2r)

    return out[:M].reshape(B, K, 1)


def init_params(key, d0=256, d1=128):
    """Deterministic init mimicking nn.Linear (uniform +/- 1/sqrt(fan_in))."""
    def linear(key, fan_in, fan_out):
        kw, kb = jax.random.split(key)
        bound = 1.0 / jnp.sqrt(fan_in)
        w = jax.random.uniform(kw, (fan_out, fan_in), jnp.float32, -bound, bound)
        b = jax.random.uniform(kb, (fan_out,), jnp.float32, -bound, bound)
        return w, b

    k0, k1, k2 = jax.random.split(key, 3)
    return [linear(k0, d0, d1), linear(k1, d1, d1), linear(k2, d1, 1)]


def mlp_reference_bf16(x, params_list):
    """bf16-operand / f32-accumulate reference matching the kernel's numerics."""
    B, K = x.shape[0], x.shape[1]
    (w0, b0), (w1, b1), (w2, b2) = params_list
    h = x.reshape(B, K, -1)
    h = jnp.tanh(jnp.dot(h.astype(jnp.bfloat16), w0.T.astype(jnp.bfloat16),
                         preferred_element_type=jnp.float32) + b0)
    h = jnp.tanh(jnp.dot(h.astype(jnp.bfloat16), w1.T.astype(jnp.bfloat16),
                         preferred_element_type=jnp.float32) + b1)
    return h @ w2.T + b2


def mlp_reference_f32(x, params_list):
    B, K = x.shape[0], x.shape[1]
    (w0, b0), (w1, b1), (w2, b2) = params_list
    h = x.reshape(B, K, -1)
    h = jnp.tanh(h @ w0.T + b0)
    h = jnp.tanh(h @ w1.T + b1)
    return h @ w2.T + b2


if __name__ == "__main__":
    key = jax.random.PRNGKey(0)
    kx, kp = jax.random.split(key)

    # (B=2, top_k=8, 16, 16) -> flatten(start_dim=2) -> (2, 8, 256)
    x = jax.random.normal(kx, (2, 8, 16, 16), dtype=jnp.float32)
    params_list = init_params(kp, d0=256, d1=128)
    prepared = prepare_params(params_list)

    out = mlp_forward(x, prepared)
    out = jax.block_until_ready(out)

    assert out.shape == (2, 8, 1), out.shape

    # Tight check vs a reference with matching (bf16-operand, f32-accumulate) numerics.
    ref_bf16 = mlp_reference_bf16(x, params_list)
    assert jnp.allclose(out, ref_bf16, atol=1e-3, rtol=1e-3), "mismatch vs bf16-consistent reference"

    # Loose check vs the full-f32 reference (bf16 operand rounding only).
    ref_f32 = mlp_reference_f32(x, params_list)
    assert jnp.allclose(out, ref_f32, atol=5e-2, rtol=5e-2), "mismatch vs f32 reference"

    print("KERNEL_OK")
</pallas_src>

<mosaic_0001>
module attributes {stable_mosaic.version = 11 : i64} {
  func.func @mlp_kernel(%arg0: i32, %arg1: memref<16x256xbf16, #tpu.memory_space<vmem>>, %arg2: memref<256x128xbf16, #tpu.memory_space<vmem>>, %arg3: memref<1x128xf32, #tpu.memory_space<vmem>>, %arg4: memref<128x128xbf16, #tpu.memory_space<vmem>>, %arg5: memref<1x128xf32, #tpu.memory_space<vmem>>, %arg6: memref<1x128xf32, #tpu.memory_space<vmem>>, %arg7: memref<1x1xf32, #tpu.memory_space<vmem>>, %arg8: memref<16x1xf32, #tpu.memory_space<vmem>>) attributes {dimension_semantics = [#tpu.dimension_semantics<parallel>], iteration_bounds = array<i64: 1>, scalar_prefetch = 0 : i64, scratch_operands = 0 : i64, tpu.core_type = #tpu.core_type<tc>, window_params = [{transform_indices = @transform_0, window_bounds = array<i64: 16, 256>}, {pipeline_mode = #tpu.pipeline_mode<synchronous>, transform_indices = @transform_1, window_bounds = array<i64: 256, 128>}, {pipeline_mode = #tpu.pipeline_mode<synchronous>, transform_indices = @transform_2, window_bounds = array<i64: 1, 128>}, {pipeline_mode = #tpu.pipeline_mode<synchronous>, transform_indices = @transform_3, window_bounds = array<i64: 128, 128>}, {pipeline_mode = #tpu.pipeline_mode<synchronous>, transform_indices = @transform_4, window_bounds = array<i64: 1, 128>}, {pipeline_mode = #tpu.pipeline_mode<synchronous>, transform_indices = @transform_5, window_bounds = array<i64: 1, 128>}, {pipeline_mode = #tpu.pipeline_mode<synchronous>, transform_indices = @transform_6, window_bounds = array<i64: 1, 1>}, {transform_indices = @transform_7, window_bounds = array<i64: 16, 1>}]} {
    %c0 = arith.constant 0 : index
    %c0_0 = arith.constant 0 : index
    %0 = vector.load %arg1[%c0, %c0_0] : memref<16x256xbf16, #tpu.memory_space<vmem>>, vector<16x256xbf16>
    %c0_1 = arith.constant 0 : index
    %c0_2 = arith.constant 0 : index
    %1 = vector.load %arg2[%c0_1, %c0_2] : memref<256x128xbf16, #tpu.memory_space<vmem>>, vector<256x128xbf16>
    %cst = arith.constant dense<0.000000e+00> : vector<16x128xf32>
    %2 = tpu.matmul %0, %1, %cst {dimension_numbers = #tpu.dot_dimension_numbers<[1], [0], [0], [1], [0, 0, 1, 1], [], []>} : vector<16x256xbf16>, vector<256x128xbf16>, vector<16x128xf32> -> vector<16x128xf32>
    %c0_3 = arith.constant 0 : index
    %c0_4 = arith.constant 0 : index
    %3 = vector.load %arg3[%c0_3, %c0_4] : memref<1x128xf32, #tpu.memory_space<vmem>>, vector<1x128xf32>
    %4 = vector.broadcast %3 : vector<1x128xf32> to vector<16x128xf32>
    %5 = arith.addf %2, %4 : vector<16x128xf32>
    %6 = math.tanh %5 : vector<16x128xf32>
    %7 = arith.truncf %6 : vector<16x128xf32> to vector<16x128xbf16>
    %c0_5 = arith.constant 0 : index
    %c0_6 = arith.constant 0 : index
    %8 = vector.load %arg4[%c0_5, %c0_6] : memref<128x128xbf16, #tpu.memory_space<vmem>>, vector<128x128xbf16>
    %cst_7 = arith.constant dense<0.000000e+00> : vector<16x128xf32>
    %9 = tpu.matmul %7, %8, %cst_7 {dimension_numbers = #tpu.dot_dimension_numbers<[1], [0], [0], [1], [0, 0, 1, 1], [], []>} : vector<16x128xbf16>, vector<128x128xbf16>, vector<16x128xf32> -> vector<16x128xf32>
    %c0_8 = arith.constant 0 : index
    %c0_9 = arith.constant 0 : index
    %10 = vector.load %arg5[%c0_8, %c0_9] : memref<1x128xf32, #tpu.memory_space<vmem>>, vector<1x128xf32>
    %11 = vector.broadcast %10 : vector<1x128xf32> to vector<16x128xf32>
    %12 = arith.addf %9, %11 : vector<16x128xf32>
    %13 = math.tanh %12 : vector<16x128xf32>
    %c0_10 = arith.constant 0 : index
    %c0_11 = arith.constant 0 : index
    %14 = vector.load %arg6[%c0_10, %c0_11] : memref<1x128xf32, #tpu.memory_space<vmem>>, vector<1x128xf32>
    %15 = vector.broadcast %14 : vector<1x128xf32> to vector<16x128xf32>
    %16 = arith.mulf %13, %15 : vector<16x128xf32>
    %cst_12 = arith.constant dense<0.000000e+00> : vector<16xf32>
    %17 = vector.multi_reduction <add>, %16, %cst_12 [1] : vector<16x128xf32> to vector<16xf32>
    %18 = vector.shape_cast %17 : vector<16xf32> to vector<16x1xf32>
    %c0_13 = arith.constant 0 : index
    %c0_14 = arith.constant 0 : index
    %19 = vector.load %arg7[%c0_13, %c0_14] : memref<1x1xf32, #tpu.memory_space<vmem>>, vector<1x1xf32>
    %20 = vector.broadcast %19 : vector<1x1xf32> to vector<16x1xf32>
    %21 = arith.addf %18, %20 : vector<16x1xf32>
    %c0_15 = arith.constant 0 : index
    %c0_16 = arith.constant 0 : index
    %22 = vector.load %arg8[%c0_15, %c0_16] : memref<16x1xf32, #tpu.memory_space<vmem>>, vector<16x1xf32>
    tpu.vector_store %arg8[%c0_15, %c0_16], %21 {strides = array<i32>} : memref<16x1xf32, #tpu.memory_space<vmem>>, vector<16x1xf32>,
    return
  }
  func.func @transform_0(%arg0: i32) -> (i32, i32) {
    %c0_i32 = arith.constant 0 : i32
    %c0_i32_0 = arith.constant 0 : i32
    return %arg0, %c0_i32 : i32, i32
  }
  func.func @transform_1(%arg0: i32) -> (i32, i32) {
    %c0_i32 = arith.constant 0 : i32
    %c0_i32_0 = arith.constant 0 : i32
    %c0_i32_1 = arith.constant 0 : i32
    return %c0_i32, %c0_i32_0 : i32, i32
  }
  func.func @transform_2(%arg0: i32) -> (i32, i32) {
    %c0_i32 = arith.constant 0 : i32
    %c0_i32_0 = arith.constant 0 : i32
    %c0_i32_1 = arith.constant 0 : i32
    return %c0_i32, %c0_i32_0 : i32, i32
  }
  func.func @transform_3(%arg0: i32) -> (i32, i32) {
    %c0_i32 = arith.constant 0 : i32
    %c0_i32_0 = arith.constant 0 : i32
    %c0_i32_1 = arith.constant 0 : i32
    return %c0_i32, %c0_i32_0 : i32, i32
  }
  func.func @transform_4(%arg0: i32) -> (i32, i32) {
    %c0_i32 = arith.constant 0 : i32
    %c0_i32_0 = arith.constant 0 : i32
    %c0_i32_1 = arith.constant 0 : i32
    return %c0_i32, %c0_i32_0 : i32, i32
  }
  func.func @transform_5(%arg0: i32) -> (i32, i32) {
    %c0_i32 = arith.constant 0 : i32
    %c0_i32_0 = arith.constant 0 : i32
    %c0_i32_1 = arith.constant 0 : i32
    return %c0_i32, %c0_i32_0 : i32, i32
  }
  func.func @transform_6(%arg0: i32) -> (i32, i32) {
    %c0_i32 = arith.constant 0 : i32
    %c0_i32_0 = arith.constant 0 : i32
    %c0_i32_1 = arith.constant 0 : i32
    return %c0_i32, %c0_i32_0 : i32, i32
  }
  func.func @transform_7(%arg0: i32) -> (i32, i32) {
    %c0_i32 = arith.constant 0 : i32
    %c0_i32_0 = arith.constant 0 : i32
    return %arg0, %c0_i32 : i32, i32
  }
}

</mosaic_0001>

<bundles_post_ra>
// kernel: mlp_forward.1
= control target key start
LH: loop header
LB: loop body
LE: loop exit
PB: predicated region body
PF: predicated region fallthrough
CT: control target
= control target key end

     0   :  { %vm303_vm0 = vcmask 7168   ;;  %s594_s1 = inlined_call_operand.vmem [shape: bf16[256,128], index: 1, kind: input, shape index: {}]   ;;  %s595_s3 = inlined_call_operand.vmem [shape: bf16[128,128], index: 3, kind: input, shape index: {}]   ;;  %s596_s2 = inlined_call_operand.vmem [shape: f32[1,128], index: 2, kind: input, shape index: {}]   ;;  %s597_s0 = inlined_call_operand.vmem [shape: bf16[16,256], index: 0, kind: input, shape index: {}]   ;;  %s598_s4 = inlined_call_operand.vmem [shape: f32[1,128], index: 4, kind: input, shape index: {}]   ;;  %s599_s5 = inlined_call_operand.vmem [shape: f32[1,128], index: 5, kind: input, shape index: {}]   ;;  %s600_s6 = inlined_call_operand.<no memory space> [shape: f32[1,1], index: 6, kind: input, shape index: {}]   ;;  %s601_s7 = inlined_call_operand.vmem [shape: f32[16,1], index: 7, kind: output, shape index: {}]  }
   0x1   :  { %v423_v0 = vld [vmem:[%s594_s1 + $0x38] sm:$0xff]  ;;  %v422_v2 = vld [vmem:[%s594_s1 + $0x30] sm:$0xff]  ;;  %v421_v4 = vld [vmem:[%s594_s1 + $0x28] sm:$0xff]  ;;  %v12_v42 = vstv %s600_s6 }
   0x2   :  { %v431_v1 = vld [vmem:[%s594_s1 + $0x78] sm:$0xff]  ;;  %172 = vmatpush.bf16.msra.mxu0 %v423_v0  ;;  %v430_v3 = vld [vmem:[%s594_s1 + $0x70] sm:$0xff]  ;;  %v429_v5 = vld [vmem:[%s594_s1 + $0x68] sm:$0xff]  ;;  %13 = vst [vmem:[#allocation2] sm:$0x1] %v12_v42 }
   0x3   :  { %186 = vmatpush.bf16.msra.mxu1 %v431_v1  ;;  %v439_v6 = vld [vmem:[%s595_s3 + $0x38] sm:$0xff]  ;;  %v438_v7 = vld [vmem:[%s595_s3 + $0x30] sm:$0xff]  ;;  %v420_v8 = vld [vmem:[%s594_s1 + $0x20] sm:$0xff] }
   0x4   :  { %271 = vmatpush.bf16.msra.mxu2 %v439_v6  ;;  %v428_v9 = vld [vmem:[%s594_s1 + $0x60] sm:$0xff]  ;;  %v437_v10 = vld [vmem:[%s595_s3 + $0x28] sm:$0xff]  ;;  %v419_v11 = vld [vmem:[%s594_s1 + $0x18] sm:$0xff] }
   0x5   :  { %v427_v12 = vld [vmem:[%s594_s1 + $0x58] sm:$0xff]  ;;  %v418_v13 = vld [vmem:[%s594_s1 + $0x10] sm:$0xff]  ;;  %v417_v15 = vld [vmem:[%s594_s1 + $0x8] sm:$0xff] }
   0x6   :  { %173 = vmatpush.bf16.msra.mxu0 %v422_v2  ;;  %v426_v14 = vld [vmem:[%s594_s1 + $0x50] sm:$0xff]  ;;  %v425_v16 = vld [vmem:[%s594_s1 + $0x48] sm:$0xff]  ;;  %v416_v17 = vld [vmem:[%s594_s1] sm:$0xff] }
   0x7   :  { %187 = vmatpush.bf16.msra.mxu1 %v430_v3  ;;  %v424_v18 = vld [vmem:[%s594_s1 + $0x40] sm:$0xff]  ;;  %v415_v20 = vld [vmem:[%s597_s0 + $0x4] sm:$0xf0]  ;;  %v314_v22 = vld [vmem:[%s597_s0 + $0x8] sm:$0xf0] }
   0x8   :  { %272 = vmatpush.bf16.msra.mxu2 %v438_v7  ;;  %v312_v19 = vld [vmem:[%s597_s0] sm:$0xf]  ;;  %v414_v21 = vld [vmem:[%s597_s0 + $0x4] sm:$0xf]  ;;  %v435_v26 = vld [vmem:[%s595_s3 + $0x18] sm:$0xff] }
   0x9   :  { %v313_v23 = vor.u32 %v415_v20, %v312_v19  ;;  %v317_v24 = vor.u32 %v414_v21, %v314_v22  ;;  %v436_v25 = vld [vmem:[%s595_s3 + $0x20] sm:$0xff]  ;;  %v434_v27 = vld [vmem:[%s595_s3 + $0x10] sm:$0xff]  ;;  %v433_v28 = vld [vmem:[%s595_s3 + $0x8] sm:$0xff] }
   0xa   :  { %174 = vmatpush.bf16.msra.mxu0 %v421_v4  ;;  %v432_v29 = vld [vmem:[%s595_s3] sm:$0xff] }
   0xb   :  { %188 = vmatpush.bf16.msra.mxu1 %v429_v5  ;;  %v440_v30 = vld [vmem:[%s596_s2] ss:$0 sm:$0xff] }
   0xc   :  { %273 = vmatpush.bf16.msra.mxu2 %v437_v10  ;;  %v441_v43 = vld [vmem:[%s598_s4] ss:$0 sm:$0xff] }
   0xd   :  { %v442_v46 = vld [vmem:[%s599_s5] ss:$0 sm:$0xff] }
   0xe   :  { %175 = vmatpush.bf16.msra.mxu0 %v420_v8  ;;  %v443_v53 = vld [vmem:[#allocation2] ss:$0 sm:$0xff] }
   0xf   :  { %189 = vmatpush.bf16.msra.mxu1 %v428_v9 }
  0x10   :  { %274 = vmatpush.bf16.msra.mxu2 %v436_v25 }
  0x12   :  { %176 = vmatpush.bf16.msra.mxu0 %v419_v11 }
  0x13   :  { %190 = vmatpush.bf16.msra.mxu1 %v427_v12 }
  0x14   :  { %275 = vmatpush.bf16.msra.mxu2 %v435_v26 }
  0x16   :  { %177 = vmatpush.bf16.msra.mxu0 %v418_v13 }
  0x17   :  { %191 = vmatpush.bf16.msra.mxu1 %v426_v14 }
  0x18   :  { %276 = vmatpush.bf16.msra.mxu2 %v434_v27 }
  0x1a   :  { %178 = vmatpush.bf16.msra.mxu0 %v417_v15 }
  0x1b   :  { %192 = vmatpush.bf16.msra.mxu1 %v425_v16 }
  0x1c   :  { %277 = vmatpush.bf16.msra.mxu2 %v433_v28 }
  0x1e   :  { %179 = vmatpush.bf16.msra.mxu0 %v416_v17 }
  0x1f   :  { %193 = vmatpush.bf16.msra.mxu1 %v424_v18 }
  0x20   :  { %278 = vmatpush.bf16.msra.mxu2 %v432_v29 }
  0x21   :  { %180 = vmatmul.bf16.vlgmr.msra.gmra.mxu0 %v313_v23 }
  0x22   :  { %194 = vmatmul.bf16.vlgmr.msra.gmra.mxu1 %v317_v24 }
  0x9e   :  { %v181_v31 = vpop.f32.mrf.mxu0 }
  0x9f   :  { %v195_v32 = vpop.f32.mrf.mxu1  ;;  %v182_v33 = vadd.f32 %v440_v30, %v181_v31 }
  0xa1   :  { %v196_v34 = vadd.f32 %v195_v32, %v182_v33 }
  0xa3   :  { %444 = vtanh.f32 %v196_v34 }
  0xa6   :  { %v183_v35 = vpop.f32.mrf.mxu0 }
  0xa7   :  { %v184_v36 = vadd.f32 %v440_v30, %v183_v35  ;;  %v197_v37 = vpop.f32.mrf.mxu1 }
  0xa9   :  { %v198_v38 = vadd.f32 %v197_v37, %v184_v36  ;;  %v445_v39 = vpop.eup %444 }
  0xab   :  { %446 = vtanh.f32 %v198_v38 }
  0xb1   :  { %v447_v40 = vpop.eup %446 }
  0xb2   :  { %v202_v41 = vpack.c.bf16 %v447_v40, %v445_v39 }
  0xb4   :  { %279 = vmatmul.bf16.vlgmr.msra.gmra.mxu2 %v202_v41 }
 0x137   :  { %v280_v44 = vpop.f32.mrf.mxu2 }
 0x138   :  { %v281_v45 = vadd.f32 %v441_v43, %v280_v44 }
 0x13a   :  { %448 = vtanh.f32 %v281_v45 }
 0x13f   :  { %v282_v47 = vpop.f32.mrf.mxu2 }
 0x140   :  { %v449_v48 = vpop.eup %448  ;;  %v283_v49 = vadd.f32 %v441_v43, %v282_v47 }
 0x141   :  { %v291_v50 = vmul.f32 %v449_v48, %v442_v46 }
 0x142   :  { %450 = vtanh.f32 %v283_v49 }
 0x143   :  { %293 = vadd.xlane.f32.xlu0 %v291_v50 }
 0x148   :  { %v451_v51 = vpop.eup %450 }
 0x149   :  { %v292_v52 = vmul.f32 %v451_v51, %v442_v46 }
 0x14b   :  { %295 = vadd.xlane.f32.xlu0 %v292_v52 }
 0x1b6   :  { %v294_v54 = vpop.xlane.xlu0 %293 }
 0x1b7   :  { %v301_v55 = vadd.f32 %v443_v53, %v294_v54 }
 0x1b9   :  { %304 = vst.msk [vmem:[%s601_s7] sm:$0xff] %vm303_vm0, %v301_v55 }
 0x1be   :  { %v296_v56 = vpop.xlane.xlu0 %295 }
 0x1bf   :  { %v302_v57 = vadd.f32 %v443_v53, %v296_v56 }
 0x1c1   :  { %305 = vst.msk [vmem:[%s601_s7 + $0x8] sm:$0xff] %vm303_vm0, %v302_v57 }

</bundles_post_ra>
